<compile_context>
chip_gen: v6e
topology: v6e:2x2x1
jax: 0.10.0
libtpu: 0.0.40
codegen_flags: <defaults>
</compile_context>

<pallas_src>
import functools
import math

import jax
import jax.numpy as jnp
from jax import lax
from jax.experimental import pallas as pl
from jax.experimental.pallas import tpu as pltpu

_LANE = 128          # TPU lane width; pad the narrow hidden dim up to this.
_MAX_BLOCK_B = 1024  # largest batch tile (VMEM footprint stays ~1 MB/tile).


def _round_up(x, m):
    return ((x + m - 1) // m) * m


def _cdiv(a, b):
    return (a + b - 1) // b


def _gelu(x, approximate):
    if approximate:
        # tanh-approx GELU: ~2-3x less EUP work; NOT bit-identical to torch's
        # default nn.GELU() (which is erf-based).
        c = math.sqrt(2.0 / math.pi)
        return 0.5 * x * (1.0 + jnp.tanh(c * (x + 0.044715 * x * x * x)))
    # Exact GELU (matches torch.nn.GELU(approximate='none')).
    return 0.5 * x * (1.0 + lax.erf(x * (1.0 / math.sqrt(2.0))))


def _qnet_kernel(x_ref, w1_ref, b1_ref, w2_ref, b2_ref, w3_ref, b3_ref, o_ref,
                 *, gelu_approximate):
    # MXU accumulates in f32 via preferred_element_type; biases and GELU stay
    # in f32 (v5e has no bf16 VPU/EUP), operands may be bf16 or f32.
    x = x_ref[...]

    h1 = jnp.dot(x, w1_ref[...], preferred_element_type=jnp.float32) + b1_ref[...]
    h1 = _gelu(h1, gelu_approximate).astype(w2_ref.dtype)

    h2 = jnp.dot(h1, w2_ref[...], preferred_element_type=jnp.float32) + b2_ref[...]
    h2 = _gelu(h2, gelu_approximate).astype(w3_ref.dtype)

    out = jnp.dot(h2, w3_ref[...], preferred_element_type=jnp.float32) + b3_ref[...]
    o_ref[...] = out.astype(o_ref.dtype)


def prepare_params(params, compute_dtype=jnp.bfloat16):
    """One-time parameter prep (keep OUT of the per-step hot path).

    params: (w1 [d_in,128], b1 [128], w2 [128,64], b2 [64],
             w3 [64,n_act], b3 [n_act])  -- weights stored [in, out].

    Returns lane-padded, dtype-cast params:
      * weights cast to `compute_dtype` (bf16 => native MXU rate on v6e/v7x,
        half the weight/activation traffic; f32 also supported),
      * biases kept f32 (added to the f32 MXU accumulator),
      * hidden dim 64 zero-padded to 128 so every intermediate is lane-dense.
        Exactness is preserved: padded columns/rows are zero and GELU(0)=0.
    """
    w1, b1, w2, b2, w3, b3 = params
    d_in, h1 = w1.shape
    h2 = w2.shape[1]
    n_act = w3.shape[1]
    h2_p = _round_up(max(h2, _LANE), _LANE)  # 64 -> 128

    w1c = w1.astype(compute_dtype)
    b1r = b1.reshape(1, h1).astype(jnp.float32)
    w2p = jnp.zeros((h1, h2_p), compute_dtype).at[:, :h2].set(w2.astype(compute_dtype))
    b2p = jnp.zeros((1, h2_p), jnp.float32).at[0, :h2].set(b2.astype(jnp.float32))
    w3p = jnp.zeros((h2_p, n_act), compute_dtype).at[:h2, :].set(w3.astype(compute_dtype))
    b3r = b3.reshape(1, n_act).astype(jnp.float32)
    return (w1c, b1r, w2p, b2p, w3p, b3r)


def _choose_batch_tiling(B):
    """Pick (block_b, B_pad): big tiles (fill MXU M, amortize ~600 cyc/step),
    minimal last-tile padding, and >= 2 (even) grid steps whenever B >= 16 so
    v7x's two TensorCores both get work via the 'parallel' batch axis."""
    B8 = _round_up(B, 8)
    if B8 < 16:
        return B8, B8
    n_tiles = max(2, _cdiv(B8, _MAX_BLOCK_B))
    n_tiles += n_tiles % 2                      # even tile count for 2 TCs
    block_b = _round_up(_cdiv(B8, n_tiles), 8)
    B_pad = _round_up(B8, block_b)
    return block_b, B_pad


def agent_qnetwork_forward(states_actions, prepared_params, *, gelu_approximate=False):
    """Fused 3-layer MLP forward.

    states_actions: [B, num_inputs + num_actions]
    prepared_params: output of prepare_params()
    Returns [B, num_actions] in the input dtype.
    """
    w1, b1, w2, b2, w3, b3 = prepared_params
    B, d_in = states_actions.shape
    assert d_in == w1.shape[0], "input feature dim must match W1"
    h1 = w1.shape[1]          # 128
    h2p = w2.shape[1]         # 128 (padded from 64)
    n_act = w3.shape[1]       # num_actions (narrow output, lane-masked store)
    out_dtype = states_actions.dtype

    # Cast activations to the prepared compute dtype (bf16 by default).
    x = states_actions.astype(w1.dtype)

    # Batch tiling (+ pad ragged batches so any B works).
    block_b, B_pad = _choose_batch_tiling(B)
    if B_pad != B:
        x = jnp.pad(x, ((0, B_pad - B), (0, 0)))
    grid = (B_pad // block_b,)

    const = lambda i: (0, 0)  # weights/biases: same block every step (VMEM-resident)

    kernel = functools.partial(_qnet_kernel, gelu_approximate=gelu_approximate)

    # Advisory cost estimate for XLA's scheduler.
    flops = 2 * B_pad * (d_in * h1 + h1 * h2p + h2p * n_act)
    transcendentals = B_pad * (h1 + h2p)
    bytes_accessed = int(
        B_pad * d_in * jnp.dtype(x.dtype).itemsize
        + sum(int(p.size) * jnp.dtype(p.dtype).itemsize for p in prepared_params)
        + B_pad * n_act * jnp.dtype(out_dtype).itemsize
    )

    out = pl.pallas_call(
        kernel,
        out_shape=jax.ShapeDtypeStruct((B_pad, n_act), out_dtype),
        grid_spec=pl.GridSpec(
            grid=grid,
            in_specs=[
                pl.BlockSpec((block_b, d_in), lambda i: (i, 0)),  # x tile
                pl.BlockSpec((d_in, h1), const),                  # W1
                pl.BlockSpec((1, h1), const),                     # b1 (f32)
                pl.BlockSpec((h1, h2p), const),                   # W2 (row/col padded)
                pl.BlockSpec((1, h2p), const),                    # b2 (padded, f32)
                pl.BlockSpec((h2p, n_act), const),                # W3 (rows padded)
                pl.BlockSpec((1, n_act), const),                  # b3 (f32)
            ],
            out_specs=pl.BlockSpec((block_b, n_act), lambda i: (i, 0)),
        ),
        compiler_params=pltpu.CompilerParams(
            dimension_semantics=("parallel",),  # shards batch tiles over v7x's 2 TCs
        ),
        cost_estimate=pl.CostEstimate(
            flops=flops,
            transcendentals=transcendentals,
            bytes_accessed=bytes_accessed,
        ),
    )(x, w1, b1, w2, b2, w3, b3)

    # Strip batch padding only (no lane padding on the output anymore).
    return out[:B] if B_pad != B else out


def init_params(key, num_inputs, num_actions):
    """Deterministic init matching the PyTorch module's reset_parameters():
    xavier_uniform_ weights, PyTorch-default uniform(-1/sqrt(fan_in)) biases."""
    d_in = num_inputs + num_actions
    dims = [(d_in, 128), (128, 64), (64, num_actions)]
    params = []
    for (fan_in, fan_out) in dims:
        key, kw, kb = jax.random.split(key, 3)
        limit = math.sqrt(6.0 / (fan_in + fan_out))  # xavier uniform
        w = jax.random.uniform(kw, (fan_in, fan_out), jnp.float32, -limit, limit)
        bb = 1.0 / math.sqrt(fan_in)
        b = jax.random.uniform(kb, (fan_out,), jnp.float32, -bb, bb)
        params.extend([w, b])
    return tuple(params)


def _reference_forward(x, params):
    w1, b1, w2, b2, w3, b3 = params
    h = jax.nn.gelu(x @ w1 + b1, approximate=False)
    h = jax.nn.gelu(h @ w2 + b2, approximate=False)
    return h @ w3 + b3


if __name__ == "__main__":
    num_inputs = 10
    num_actions = 6
    batch = 64

    key = jax.random.PRNGKey(0)
    key, kx = jax.random.split(key)
    states_actions = jax.random.normal(
        kx, (batch, num_inputs + num_actions), jnp.float32
    )
    params = init_params(key, num_inputs, num_actions)
    ref = _reference_forward(states_actions, params)

    fwd = jax.jit(agent_qnetwork_forward)

    # Default bf16-operand path (native MXU rate on v6e/v7x), f32 accumulation.
    prepared_bf16 = prepare_params(params, compute_dtype=jnp.bfloat16)
    out = jax.block_until_ready(fwd(states_actions, prepared_bf16))
    assert out.shape == (batch, num_actions)
    assert jnp.allclose(out, ref, atol=5e-2, rtol=5e-2), "bf16 path mismatch"

    # Full-f32 operand path for tighter parity with the reference.
    prepared_f32 = prepare_params(params, compute_dtype=jnp.float32)
    out_f32 = jax.block_until_ready(fwd(states_actions, prepared_f32))
    assert jnp.allclose(out_f32, ref, atol=1e-3, rtol=1e-3), "f32 path mismatch"

    # Ragged batch (no divisibility requirement; padded rows are sliced off).
    ragged = states_actions[:37]
    out_r = jax.block_until_ready(fwd(ragged, prepared_bf16))
    ref_r = _reference_forward(ragged, params)
    assert out_r.shape == (37, num_actions)
    assert jnp.allclose(out_r, ref_r, atol=5e-2, rtol=5e-2), "ragged-batch mismatch"

    print("KERNEL_OK")
</pallas_src>

<mosaic_0001>
module attributes {stable_mosaic.version = 11 : i64} {
  func.func @_qnet_kernel(%arg0: i32, %arg1: memref<32x16xbf16, #tpu.memory_space<vmem>>, %arg2: memref<16x128xbf16, #tpu.memory_space<vmem>>, %arg3: memref<1x128xf32, #tpu.memory_space<vmem>>, %arg4: memref<128x128xbf16, #tpu.memory_space<vmem>>, %arg5: memref<1x128xf32, #tpu.memory_space<vmem>>, %arg6: memref<128x6xbf16, #tpu.memory_space<vmem>>, %arg7: memref<1x6xf32, #tpu.memory_space<vmem>>, %arg8: memref<32x6xf32, #tpu.memory_space<vmem>>) attributes {dimension_semantics = [#tpu.dimension_semantics<parallel>], iteration_bounds = array<i64: 2>, scalar_prefetch = 0 : i64, scratch_operands = 0 : i64, tpu.core_type = #tpu.core_type<tc>, window_params = [{transform_indices = @transform_0, window_bounds = array<i64: 32, 16>}, {pipeline_mode = #tpu.pipeline_mode<synchronous>, transform_indices = @transform_1, window_bounds = array<i64: 16, 128>}, {pipeline_mode = #tpu.pipeline_mode<synchronous>, transform_indices = @transform_2, window_bounds = array<i64: 1, 128>}, {pipeline_mode = #tpu.pipeline_mode<synchronous>, transform_indices = @transform_3, window_bounds = array<i64: 128, 128>}, {pipeline_mode = #tpu.pipeline_mode<synchronous>, transform_indices = @transform_4, window_bounds = array<i64: 1, 128>}, {pipeline_mode = #tpu.pipeline_mode<synchronous>, transform_indices = @transform_5, window_bounds = array<i64: 128, 6>}, {pipeline_mode = #tpu.pipeline_mode<synchronous>, transform_indices = @transform_6, window_bounds = array<i64: 1, 6>}, {transform_indices = @transform_7, window_bounds = array<i64: 32, 6>}]} {
    %c0 = arith.constant 0 : index
    %c0_0 = arith.constant 0 : index
    %0 = vector.load %arg1[%c0, %c0_0] : memref<32x16xbf16, #tpu.memory_space<vmem>>, vector<32x16xbf16>
    %c0_1 = arith.constant 0 : index
    %c0_2 = arith.constant 0 : index
    %1 = vector.load %arg2[%c0_1, %c0_2] : memref<16x128xbf16, #tpu.memory_space<vmem>>, vector<16x128xbf16>
    %cst = arith.constant dense<0.000000e+00> : vector<32x128xf32>
    %2 = tpu.matmul %0, %1, %cst {dimension_numbers = #tpu.dot_dimension_numbers<[1], [0], [0], [1], [0, 0, 1, 1], [], []>} : vector<32x16xbf16>, vector<16x128xbf16>, vector<32x128xf32> -> vector<32x128xf32>
    %c0_3 = arith.constant 0 : index
    %c0_4 = arith.constant 0 : index
    %3 = vector.load %arg3[%c0_3, %c0_4] : memref<1x128xf32, #tpu.memory_space<vmem>>, vector<1x128xf32>
    %4 = vector.broadcast %3 : vector<1x128xf32> to vector<32x128xf32>
    %5 = arith.addf %2, %4 : vector<32x128xf32>
    %cst_5 = arith.constant 5.000000e-01 : f32
    %6 = vector.broadcast %cst_5 : f32 to vector<32x128xf32>
    %7 = arith.mulf %6, %5 : vector<32x128xf32>
    %cst_6 = arith.constant 0.707106769 : f32
    %8 = vector.broadcast %cst_6 : f32 to vector<32x128xf32>
    %9 = arith.mulf %5, %8 : vector<32x128xf32>
    %10 = math.erf %9 : vector<32x128xf32>
    %cst_7 = arith.constant 1.000000e+00 : f32
    %11 = vector.broadcast %cst_7 : f32 to vector<32x128xf32>
    %12 = arith.addf %11, %10 : vector<32x128xf32>
    %13 = arith.mulf %7, %12 : vector<32x128xf32>
    %14 = arith.truncf %13 : vector<32x128xf32> to vector<32x128xbf16>
    %c0_8 = arith.constant 0 : index
    %c0_9 = arith.constant 0 : index
    %15 = vector.load %arg4[%c0_8, %c0_9] : memref<128x128xbf16, #tpu.memory_space<vmem>>, vector<128x128xbf16>
    %cst_10 = arith.constant dense<0.000000e+00> : vector<32x128xf32>
    %16 = tpu.matmul %14, %15, %cst_10 {dimension_numbers = #tpu.dot_dimension_numbers<[1], [0], [0], [1], [0, 0, 1, 1], [], []>} : vector<32x128xbf16>, vector<128x128xbf16>, vector<32x128xf32> -> vector<32x128xf32>
    %c0_11 = arith.constant 0 : index
    %c0_12 = arith.constant 0 : index
    %17 = vector.load %arg5[%c0_11, %c0_12] : memref<1x128xf32, #tpu.memory_space<vmem>>, vector<1x128xf32>
    %18 = vector.broadcast %17 : vector<1x128xf32> to vector<32x128xf32>
    %19 = arith.addf %16, %18 : vector<32x128xf32>
    %cst_13 = arith.constant 5.000000e-01 : f32
    %20 = vector.broadcast %cst_13 : f32 to vector<32x128xf32>
    %21 = arith.mulf %20, %19 : vector<32x128xf32>
    %cst_14 = arith.constant 0.707106769 : f32
    %22 = vector.broadcast %cst_14 : f32 to vector<32x128xf32>
    %23 = arith.mulf %19, %22 : vector<32x128xf32>
    %24 = math.erf %23 : vector<32x128xf32>
    %cst_15 = arith.constant 1.000000e+00 : f32
    %25 = vector.broadcast %cst_15 : f32 to vector<32x128xf32>
    %26 = arith.addf %25, %24 : vector<32x128xf32>
    %27 = arith.mulf %21, %26 : vector<32x128xf32>
    %28 = arith.truncf %27 : vector<32x128xf32> to vector<32x128xbf16>
    %c0_16 = arith.constant 0 : index
    %c0_17 = arith.constant 0 : index
    %29 = vector.load %arg6[%c0_16, %c0_17] : memref<128x6xbf16, #tpu.memory_space<vmem>>, vector<128x6xbf16>
    %cst_18 = arith.constant dense<0.000000e+00> : vector<32x6xf32>
    %30 = tpu.matmul %28, %29, %cst_18 {dimension_numbers = #tpu.dot_dimension_numbers<[1], [0], [0], [1], [0, 0, 1, 1], [], []>} : vector<32x128xbf16>, vector<128x6xbf16>, vector<32x6xf32> -> vector<32x6xf32>
    %c0_19 = arith.constant 0 : index
    %c0_20 = arith.constant 0 : index
    %31 = vector.load %arg7[%c0_19, %c0_20] : memref<1x6xf32, #tpu.memory_space<vmem>>, vector<1x6xf32>
    %32 = vector.broadcast %31 : vector<1x6xf32> to vector<32x6xf32>
    %33 = arith.addf %30, %32 : vector<32x6xf32>
    %c0_21 = arith.constant 0 : index
    %c0_22 = arith.constant 0 : index
    %34 = vector.load %arg8[%c0_21, %c0_22] : memref<32x6xf32, #tpu.memory_space<vmem>>, vector<32x6xf32>
    tpu.vector_store %arg8[%c0_21, %c0_22], %33 {strides = array<i32>} : memref<32x6xf32, #tpu.memory_space<vmem>>, vector<32x6xf32>,
    return
  }
  func.func @transform_0(%arg0: i32) -> (i32, i32) {
    %c0_i32 = arith.constant 0 : i32
    %c0_i32_0 = arith.constant 0 : i32
    return %arg0, %c0_i32 : i32, i32
  }
  func.func @transform_1(%arg0: i32) -> (i32, i32) {
    %c0_i32 = arith.constant 0 : i32
    %c0_i32_0 = arith.constant 0 : i32
    %c0_i32_1 = arith.constant 0 : i32
    return %c0_i32, %c0_i32_0 : i32, i32
  }
  func.func @transform_2(%arg0: i32) -> (i32, i32) {
    %c0_i32 = arith.constant 0 : i32
    %c0_i32_0 = arith.constant 0 : i32
    %c0_i32_1 = arith.constant 0 : i32
    return %c0_i32, %c0_i32_0 : i32, i32
  }
  func.func @transform_3(%arg0: i32) -> (i32, i32) {
    %c0_i32 = arith.constant 0 : i32
    %c0_i32_0 = arith.constant 0 : i32
    %c0_i32_1 = arith.constant 0 : i32
    return %c0_i32, %c0_i32_0 : i32, i32
  }
  func.func @transform_4(%arg0: i32) -> (i32, i32) {
    %c0_i32 = arith.constant 0 : i32
    %c0_i32_0 = arith.constant 0 : i32
    %c0_i32_1 = arith.constant 0 : i32
    return %c0_i32, %c0_i32_0 : i32, i32
  }
  func.func @transform_5(%arg0: i32) -> (i32, i32) {
    %c0_i32 = arith.constant 0 : i32
    %c0_i32_0 = arith.constant 0 : i32
    %c0_i32_1 = arith.constant 0 : i32
    return %c0_i32, %c0_i32_0 : i32, i32
  }
  func.func @transform_6(%arg0: i32) -> (i32, i32) {
    %c0_i32 = arith.constant 0 : i32
    %c0_i32_0 = arith.constant 0 : i32
    %c0_i32_1 = arith.constant 0 : i32
    return %c0_i32, %c0_i32_0 : i32, i32
  }
  func.func @transform_7(%arg0: i32) -> (i32, i32) {
    %c0_i32 = arith.constant 0 : i32
    %c0_i32_0 = arith.constant 0 : i32
    return %arg0, %c0_i32 : i32, i32
  }
}

</mosaic_0001>

<bundles_post_ra>
// kernel: agent_qnetwork_forward.1
= control target key start
LH: loop header
LB: loop body
LE: loop exit
PB: predicated region body
PF: predicated region fallthrough
CT: control target
= control target key end

     0   :  { %s908_s24 = smov 0   ;;  %s989_s0 = inlined_call_operand.vmem [shape: bf16[64,16], index: 0, kind: input, shape index: {}]   ;;  %s990_s1 = inlined_call_operand.vmem [shape: bf16[16,128], index: 1, kind: input, shape index: {}]   ;;  %s991_s2 = inlined_call_operand.vmem [shape: f32[1,128], index: 2, kind: input, shape index: {}]   ;;  %s992_s3 = inlined_call_operand.vmem [shape: bf16[128,128], index: 3, kind: input, shape index: {}]   ;;  %s993_s4 = inlined_call_operand.vmem [shape: f32[1,128], index: 4, kind: input, shape index: {}]   ;;  %s994_s5 = inlined_call_operand.vmem [shape: bf16[128,6], index: 5, kind: input, shape index: {}]   ;;  %s995_s6 = inlined_call_operand.vmem [shape: f32[1,6], index: 6, kind: input, shape index: {}]   ;;  %s996_s7 = inlined_call_operand.vmem [shape: f32[64,6], index: 7, kind: output, shape index: {}]  }
   0x1 LB: > { %s713_s25 = sadd.s32 4294967295, %s866_s24   ;;  %p717_p0 = scmp.ge.s32.totalorder %s866_s24, 1  ;;  %s866_s24 = sphi %s908_s24, %s17_s24  }
   0x2   : > { %p238_p1 = scmp.lt.s32.totalorder %s866_s24, 3 }
   0x4   : > { %p239_p2 = pnand %p717_p0, %p238_p1 }
   0x5   : > { %s718_s28 = sshll.u32 (!%p239_p2), %s713_s25, 2 }
   0x6   : > { %242 = sbr.rel (%p239_p2) target bundleno = 666 (0x29a), region = 48  ;;  %p271_p3 = scmp.lt.s32.totalorder (!%p239_p2), %s718_s28, 7 }
   0xb   : > { %v825_v0 = vld [vmem:[%s990_s1] sm:$0xff]   ;;  %s998_s28 = smov (!%p271_p3, %s718_s28), 7  ;;  %vm312_vm0 = vcmask 130048   ;;  %v828_v3 = vld [vmem:[%s992_s3 + $0x38] sm:$0xff]   ;;  %v829_v4 = vld [vmem:[%s992_s3 + $0x30] sm:$0xff]   ;;  %vm652_vm1 = vcmask 48128  }
   0xc   : > { %771 = vmatprep.subr.bf16.mxu0 %v825_v0  ;;  %s719_s29 = sshll.u32 %s998_s28, 2  ;;  %777 = vmatprep.subr.bf16.mxu1 %v828_v3  ;;  %v830_v5 = vld [vmem:[%s992_s3 + $0x28] sm:$0xff]   ;;  %v831_v6 = vld [vmem:[%s992_s3 + $0x20] sm:$0xff]   ;;  %v832_v7 = vld [vmem:[%s992_s3 + $0x18] sm:$0xff]   ;;  %s721_s26 = sshll.u32 %s998_s28, 3 }
   0xd   : > { %772 = vmatpush3.bf16.msra.mxu0 %v825_v0  ;;  %s274_s9 = scalar_lea.vmem %s989_s0, %s719_s29  ;;  %778 = vmatpush3.bf16.msra.mxu1 %v828_v3  ;;  %v833_v8 = vld [vmem:[%s992_s3 + $0x10] sm:$0xff]   ;;  %v834_v9 = vld [vmem:[%s992_s3 + $0x8] sm:$0xff]   ;;  %v835_v10 = vld [vmem:[%s992_s3] sm:$0xff]  }
   0xe   : > { %v826_v1 = vld [vmem:[%s274_s9] sm:$0xff]   ;;  %v827_v2 = vld [vmem:[%s274_s9 + $0x8] sm:$0xff]   ;;  %779 = vmatprep.subr.bf16.mxu1 %v829_v4  ;;  %v836_v42 = vld [vmem:[%s994_s5 + $0x38] sm:$0xff]   ;;  %s280_s9 = scalar_lea.vmem %s996_s7, %s721_s26 }
   0xf   : > { %773 = vmatprep.mubr.msk.bf16.mxu0 %vm312_vm0, %v826_v1  ;;  %v722_v11 = vld [vmem:[%s991_s2] ss:$0 sm:$0xff]  ;;  %797 = vmatprep.subr.bf16.mxu0 %v836_v42  ;;  %v837_v43 = vld [vmem:[%s994_s5 + $0x30] sm:$0xff]   ;;  %v838_v44 = vld [vmem:[%s994_s5 + $0x28] sm:$0xff]  }
  0x10   : > { %774 = vmatmul.mubr.msk.bf16.vlgmr.msra.gmra.mxu0 %vm312_vm0, %v827_v2  ;;  %v839_v45 = vld [vmem:[%s994_s5 + $0x20] sm:$0xff]   ;;  %v840_v46 = vld [vmem:[%s994_s5 + $0x18] sm:$0xff]   ;;  %v841_v47 = vld [vmem:[%s994_s5 + $0x10] sm:$0xff]  }
  0x11   : > { %780 = vmatpush3.bf16.msra.mxu1 %v829_v4  ;;  %798 = vmatpush3.bf16.msra.mxu0 %v836_v42  ;;  %v842_v48 = vld [vmem:[%s994_s5 + $0x8] sm:$0xff]   ;;  %v843_v49 = vld [vmem:[%s994_s5] sm:$0xff]  }
  0x12   : > { %781 = vmatprep.subr.bf16.mxu1 %v830_v5  ;;  %799 = vmatprep.subr.bf16.mxu0 %v837_v43  ;;  %v728_v50 = vld [vmem:[%s993_s4] ss:$0 sm:$0xff] }
  0x15   : > { %782 = vmatpush3.bf16.msra.mxu1 %v830_v5  ;;  %800 = vmatpush3.bf16.msra.mxu0 %v837_v43 }
  0x16   : > { %783 = vmatprep.subr.bf16.mxu1 %v831_v6  ;;  %801 = vmatprep.subr.bf16.mxu0 %v838_v44 }
  0x19   : > { %784 = vmatpush3.bf16.msra.mxu1 %v831_v6  ;;  %802 = vmatpush3.bf16.msra.mxu0 %v838_v44 }
  0x1a   : > { %785 = vmatprep.subr.bf16.mxu1 %v832_v7  ;;  %803 = vmatprep.subr.bf16.mxu0 %v839_v45 }
  0x1d   : > { %786 = vmatpush3.bf16.msra.mxu1 %v832_v7  ;;  %804 = vmatpush3.bf16.msra.mxu0 %v839_v45 }
  0x1e   : > { %787 = vmatprep.subr.bf16.mxu1 %v833_v8  ;;  %805 = vmatprep.subr.bf16.mxu0 %v840_v46 }
  0x21   : > { %788 = vmatpush3.bf16.msra.mxu1 %v833_v8  ;;  %806 = vmatpush3.bf16.msra.mxu0 %v840_v46 }
  0x22   : > { %789 = vmatprep.subr.bf16.mxu1 %v834_v9  ;;  %807 = vmatprep.subr.bf16.mxu0 %v841_v47 }
  0x25   : > { %790 = vmatpush3.bf16.msra.mxu1 %v834_v9  ;;  %808 = vmatpush3.bf16.msra.mxu0 %v841_v47 }
  0x26   : > { %791 = vmatprep.subr.bf16.mxu1 %v835_v10  ;;  %809 = vmatprep.subr.bf16.mxu0 %v842_v48 }
  0x29   : > { %792 = vmatpush3.bf16.msra.mxu1 %v835_v10  ;;  %810 = vmatpush3.bf16.msra.mxu0 %v842_v48 }
  0x2a   : > { %811 = vmatprep.subr.bf16.mxu0 %v843_v49 }
  0x2d   : > { %812 = vmatpush3.bf16.msra.mxu0 %v843_v49 }
  0xd0   : > { %v775_v12 = vpop.f32.mrf.mxu0 }
  0xd1   : > { %v362_v13 = vadd.f32 %v775_v12, %v722_v11 }
  0xd2   : > { %v353_v14 = vpop.f32.mrf.mxu0 }
  0xd3   : > { %v354_v15 = vadd.f32 %v722_v11, %v353_v14  ;;  %v374_v16 = vmul.f32 0.70710677, %v362_v13  ;;  %v370_v35 = vmul.f32 0.5, %v362_v13 }
  0xd4   : > { %v776_v17 = vpop.f32.mrf.mxu0 }
  0xd5   : > { %v372_v18 = vmul.f32 0.70710677, %v354_v15  ;;  %v365_v19 = vadd.f32 %v776_v17, %v722_v11  ;;  %v368_v32 = vmul.f32 0.5, %v354_v15 }
  0xd6   : > { %v356_v20 = vpop.f32.mrf.mxu0 }
  0xd7   : > { %844 = verf.f32 %v372_v18  ;;  %v375_v21 = vmul.f32 0.70710677, %v365_v19  ;;  %v357_v22 = vadd.f32 %v722_v11, %v356_v20  ;;  %v371_v31 = vmul.f32 0.5, %v365_v19  ;;  %v737_v18 = vld [vmem:[%s995_s6] ss:$0 sm:$0xff] }
  0xd8   : > { %846 = verf.f32 %v374_v16 }
  0xd9   : > { %848 = verf.f32 %v375_v21  ;;  %v373_v23 = vmul.f32 0.70710677, %v357_v22  ;;  %v369_v33 = vmul.f32 0.5, %v357_v22 }
  0xdb   : > { %850 = verf.f32 %v373_v23 }
  0xe4   : > { %v845_v24 = vpop.eup %844 }
  0xe5   : > { %v847_v25 = vpop.eup %846  ;;  %v380_v28 = vadd.f32 1.0, %v845_v24 }
  0xe6   : > { %v849_v26 = vpop.eup %848  ;;  %v382_v30 = vadd.f32 1.0, %v847_v25 }
  0xe7   : > { %v383_v27 = vadd.f32 1.0, %v849_v26  ;;  %v384_v37 = vmul.f32 %v380_v28, %v368_v32 }
  0xe8   : > { %v851_v29 = vpop.eup %850  ;;  %v386_v39 = vmul.f32 %v382_v30, %v370_v35 }
  0xe9   : > { %v381_v34 = vadd.f32 1.0, %v851_v29  ;;  %v387_v36 = vmul.f32 %v383_v27, %v371_v31 }
  0xeb   : > { %v385_v38 = vmul.f32 %v381_v34, %v369_v33  ;;  %v389_v41 = vpack.c.bf16 %v387_v36, %v386_v39 }
  0xed   : > { %v388_v40 = vpack.c.bf16 %v385_v38, %v384_v37 }
  0xef   : > { %793 = vmatprep.mubr.bf16.mxu1 %v388_v40 }
  0xf0   : > { %794 = vmatmul.mubr.bf16.vlgmr.msra.gmra.mxu1 %v389_v41 }
 0x1b0   : > { %v795_v51 = vpop.f32.mrf.mxu1 }
 0x1b1   : > { %v504_v52 = vadd.f32 %v795_v51, %v728_v50 }
 0x1b2   : > { %v495_v53 = vpop.f32.mrf.mxu1 }
 0x1b3   : > { %v496_v54 = vadd.f32 %v728_v50, %v495_v53  ;;  %v516_v55 = vmul.f32 0.70710677, %v504_v52  ;;  %v512_v10 = vmul.f32 0.5, %v504_v52 }
 0x1b4   : > { %v796_v56 = vpop.f32.mrf.mxu1 }
 0x1b5   : > { %v514_v57 = vmul.f32 0.70710677, %v496_v54  ;;  %v507_v58 = vadd.f32 %v796_v56, %v728_v50  ;;  %v510_v7 = vmul.f32 0.5, %v496_v54 }
 0x1b6   : > { %v498_v59 = vpop.f32.mrf.mxu1 }
 0x1b7   : > { %852 = verf.f32 %v514_v57  ;;  %v517_v60 = vmul.f32 0.70710677, %v507_v58  ;;  %v499_v61 = vadd.f32 %v728_v50, %v498_v59  ;;  %v513_v6 = vmul.f32 0.5, %v507_v58 }
 0x1b8   : > { %854 = verf.f32 %v516_v55 }
 0x1b9   : > { %856 = verf.f32 %v517_v60  ;;  %v515_v62 = vmul.f32 0.70710677, %v499_v61  ;;  %v511_v8 = vmul.f32 0.5, %v499_v61 }
 0x1bb   : > { %858 = verf.f32 %v515_v62 }
 0x1c4   : > { %v853_v63 = vpop.eup %852 }
 0x1c5   : > { %v855_v0 = vpop.eup %854  ;;  %v522_v2 = vadd.f32 1.0, %v853_v63 }
 0x1c6   : > { %v857_v1 = vpop.eup %856  ;;  %v524_v5 = vadd.f32 1.0, %v855_v0 }
 0x1c7   : > { %v525_v3 = vadd.f32 1.0, %v857_v1  ;;  %v526_v12 = vmul.f32 %v522_v2, %v510_v7 }
 0x1c8   : > { %v859_v4 = vpop.eup %858  ;;  %v528_v14 = vmul.f32 %v524_v5, %v512_v10 }
 0x1c9   : > { %v523_v9 = vadd.f32 1.0, %v859_v4  ;;  %v529_v11 = vmul.f32 %v525_v3, %v513_v6 }
 0x1cb   : > { %v527_v13 = vmul.f32 %v523_v9, %v511_v8  ;;  %v531_v16 = vpack.c.bf16 %v529_v11, %v528_v14 }
 0x1cd   : > { %v530_v15 = vpack.c.bf16 %v527_v13, %v526_v12 }
 0x1cf   : > { %813 = vmatprep.mubr.bf16.mxu0 %v530_v15 }
 0x1d0   : > { %814 = vmatmul.mubr.bf16.vlgmr.msra.gmra.mxu0 %v531_v16 }
 0x290   : > { %v815_v17 = vpop.f32.mrf.mxu0 }
 0x291   : > { %v646_v24 = vadd.f32 %v815_v17, %v737_v18 }
 0x292   : > { %v637_v19 = vpop.f32.mrf.mxu0 }
 0x293   : > { %v638_v20 = vadd.f32 %v737_v18, %v637_v19  ;;  %655 = vst.msk [vmem:[%s280_s9 + $0x10] sm:$0xff] %vm652_vm1, %v646_v24 }
 0x294   : > { %v816_v21 = vpop.f32.mrf.mxu0 }
 0x295   : > { %653 = vst.msk [vmem:[%s280_s9] sm:$0xff] %vm652_vm1, %v638_v20  ;;  %v649_v25 = vadd.f32 %v816_v21, %v737_v18 }
 0x296   : > { %v640_v22 = vpop.f32.mrf.mxu0 }
 0x297   : > { %v641_v23 = vadd.f32 %v737_v18, %v640_v22  ;;  %656 = vst.msk [vmem:[%s280_s9 + $0x18] sm:$0xff] %vm652_vm1, %v649_v25 }
 0x299   : > { %654 = vst.msk [vmem:[%s280_s9 + $0x8] sm:$0xff] %vm652_vm1, %v641_v23 }
 0x29a PF: > { %s17_s24 = sadd.s32 1, %s866_s24  }
 0x29b   : > { %p14_p4 = scmp.ge.s32.totalorder %s17_s24, 4  }
 0x29d   :  { %16 = sbr.rel (!%p14_p4) target bundleno = 1 (0x1), region = 78 }

</bundles_post_ra>
